<compile_context>
chip_gen: v6e
topology: v6e:2x2x1
jax: 0.10.0
libtpu: 0.0.40
codegen_flags: <defaults>
</compile_context>

<pallas_src>
import functools

import jax
import jax.numpy as jnp
from jax.experimental import pallas as pl
from jax.experimental.pallas import tpu as pltpu


def _round_up(a: int, b: int) -> int:
    return (a + b - 1) // b * b


def _divisor_tiles(d_pad: int) -> list[int]:
    """All multiples of 128 that evenly divide d_pad (d_pad is a 128-multiple)."""
    n = d_pad // 128
    return [128 * k for k in range(1, n + 1) if n % k == 0]


def _vmem_capacity_bytes() -> int:
    try:
        return int(pltpu.get_tpu_info().vmem_capacity_bytes)
    except Exception:
        return 64 * 1024 * 1024  # conservative: v7x physical VMEM per TensorCore


def _is_v7x() -> bool:
    try:
        return "7" in jax.devices()[0].device_kind.lower()
    except Exception:
        return False


def _vmem_estimate_bytes(s_pad: int, tn: int, td: int,
                         in_item: int, out_item: int) -> int:
    """Rough per-core VMEM footprint of one pallas_call step (incl. one-hot staging)."""
    x_bufs = 2 * tn * td * in_item                       # double-buffered x stream
    idx_bufs = 2 * 8 * _round_up(tn, 128) * 4            # idx tile padded to (8, lanes)
    out_bufs = 2 * s_pad * td * out_item                 # output block buffers
    sum_acc = s_pad * td * 4                             # resident f32 accumulator
    cnt_acc = s_pad * 128 * 4                            # count accumulator (lane-padded)
    onehot = s_pad * _round_up(tn, 128) * (in_item + 4)  # one-hot + f32 count staging
    return x_bufs + idx_bufs + out_bufs + sum_acc + cnt_acc + onehot


def _mean_pool_kernel(idx_ref, x_ref, o_ref, sum_ref, cnt_ref, *,
                      n_valid: int, tn: int, mask_tail: bool):
    # idx_ref: (1, TN) int32    x_ref: (TN, TD)    o_ref: (S_pad, TD)
    # sum_ref: (S_pad, TD) f32  cnt_ref: (S_pad, 1) f32   (VMEM scratch)
    n = pl.program_id(1)
    n_last = pl.num_programs(1) - 1

    @pl.when(n == 0)
    def _init():
        sum_ref[...] = jnp.zeros_like(sum_ref)
        cnt_ref[...] = jnp.zeros_like(cnt_ref)

    x = x_ref[...]                                   # (TN, TD), keep native dtype
    if mask_tail:
        # Unpadded-x fast path: the final N tile reads past the end of x; zero
        # those rows so 0 * NaN garbage never reaches the accumulator.
        row = n * tn + jax.lax.broadcasted_iota(jnp.int32, (tn, 1), 0)
        x = jnp.where(row < n_valid, x, jnp.zeros_like(x))

    idx = idx_ref[...]                               # (1, TN) int32
    s_pad = sum_ref.shape[0]

    # Per-tile one-hot segment membership (S_pad, TN); sentinel idx -1 never matches.
    seg_iota = jax.lax.broadcasted_iota(jnp.int32, (s_pad, tn), 0)
    mask = seg_iota == idx                           # bool, broadcast (1, TN) over rows

    # Segment partial sums on the MXU: (S_pad, TN) @ (TN, TD) -> f32 accumulator.
    one_hot = mask.astype(x.dtype)                   # 0/1 exact in bf16/f32
    sum_ref[...] += jnp.dot(one_hot, x, preferred_element_type=jnp.float32)

    # Segment counts via XLU lane reduce (free slot while the MXU/DMA are busy).
    cnt_ref[...] += jnp.sum(mask.astype(jnp.float32), axis=-1, keepdims=True)

    @pl.when(n == n_last)
    def _finalize():
        inv = pl.reciprocal(jnp.maximum(cnt_ref[...], 1.0), approx=False)
        o_ref[...] = (sum_ref[...] * inv).astype(o_ref.dtype)


def mean_pooling(x: jax.Array, index: jax.Array, num_segments: int,
                 *, tn: int | None = None, td: int | None = None) -> jax.Array:
    """scatter_mean(x, index, dim=0) as a tiled, pipelined Pallas TPU kernel."""
    N, D = x.shape
    S = int(num_segments)
    itemsize = x.dtype.itemsize

    S_pad = _round_up(max(S, 1), 8)                  # sublane-aligned MXU M dim
    D_pad = _round_up(max(D, 1), 128)                # lane alignment only (no td padding)
    cands = _divisor_tiles(D_pad)

    # ---- td: a 128-multiple divisor of D_pad (never pad D past lane alignment) ----
    if td is None:
        td = D_pad if D_pad <= 2048 else min(cands, key=lambda c: abs(c - 512))
        # v7x has 2 TensorCores: make sure the "parallel" D axis has >= 2 tiles.
        if _is_v7x() and D_pad >= 256 and td == D_pad:
            smaller = [c for c in cands if c <= D_pad // 2]
            if smaller:
                td = max(smaller)
    else:
        td = min(max(128, _round_up(int(td), 128)), D_pad)
        td = max(c for c in cands if c <= td)        # snap to a divisor of D_pad

    # ---- tn: multiple of 128 (idx lane dim + x sublane dim for any dtype) ----
    if tn is None:
        base = 2048 if itemsize <= 2 else 1024       # bigger N tiles for bf16
        tn = min(base, max(128, (N // 128) * 128))
    else:
        tn = max(128, _round_up(int(tn), 128))

    # ---- shrink tiles to a VMEM budget (v7x has only 64 MiB physical per core) ----
    cap = _vmem_capacity_bytes()
    budget = max(8 << 20, int(0.55 * cap))
    while _vmem_estimate_bytes(S_pad, tn, td, itemsize, itemsize) > budget:
        if tn > 128:
            tn = max(128, (tn // 2) // 128 * 128)
        else:
            smaller = [c for c in cands if c < td]
            if not smaller:
                break
            td = max(smaller)

    # ---- input staging -------------------------------------------------------
    # Fast path: D already lane-aligned and at least one full N tile -> stream x
    # straight from HBM (no host-side padded copy); ragged tail masked in-kernel.
    no_copy = (D == D_pad) and (tn <= N)
    if no_copy:
        grid_n = -(-N // tn)
        n_idx = grid_n * tn
        x_in = x
        mask_tail = (N % tn) != 0
    else:
        n_pad = _round_up(max(N, 1), tn)
        grid_n = n_pad // tn
        n_idx = n_pad
        x_in = jnp.zeros((n_pad, D_pad), x.dtype).at[:N, :D].set(x)
        mask_tail = False

    # idx padded with sentinel -1 (never matches any one-hot row); cheap int32 copy.
    idx2d = jnp.full((1, n_idx), -1, jnp.int32).at[0, :N].set(index.astype(jnp.int32))

    grid = (D_pad // td, grid_n)                     # (parallel D, reduction N last)

    kernel = functools.partial(_mean_pool_kernel,
                               n_valid=N, tn=tn, mask_tail=mask_tail)

    cost = pl.CostEstimate(
        flops=2 * S_pad * grid_n * tn * D_pad,
        transcendentals=0,
        bytes_accessed=N * D * itemsize + S_pad * D_pad * itemsize + n_idx * 4,
    )

    out_padded = pl.pallas_call(
        kernel,
        out_shape=jax.ShapeDtypeStruct((S_pad, D_pad), x.dtype),
        grid_spec=pltpu.PrefetchScalarGridSpec(
            num_scalar_prefetch=0,
            grid=grid,
            in_specs=[
                pl.BlockSpec((1, tn), lambda d, n: (0, n)),      # index row tile
                pl.BlockSpec((tn, td), lambda d, n: (n, d)),     # streamed x tile
            ],
            out_specs=pl.BlockSpec((S_pad, td), lambda d, n: (0, d)),  # resident over N
            scratch_shapes=[
                pltpu.VMEM((S_pad, td), jnp.float32),            # segment sums acc
                pltpu.VMEM((S_pad, 1), jnp.float32),             # segment counts acc
            ],
        ),
        compiler_params=pltpu.CompilerParams(
            dimension_semantics=("parallel", "arbitrary"),
            vmem_limit_bytes=max(32 << 20, min(int(0.75 * cap), 112 << 20)),
        ),
        cost_estimate=cost,
    )(idx2d, x_in)

    return out_padded[:S, :D]


def _reference(x, index, num_segments):
    x32 = x.astype(jnp.float32)
    sums = jax.ops.segment_sum(x32, index, num_segments=num_segments)
    cnts = jax.ops.segment_sum(jnp.ones((x.shape[0], 1), jnp.float32), index,
                               num_segments=num_segments)
    return (sums / jnp.maximum(cnts, 1.0)).astype(x.dtype)


if __name__ == "__main__":
    key = jax.random.PRNGKey(0)
    k1, k2, k3, k4, k5, k6, k7, k8 = jax.random.split(key, 8)

    # --- test 1: tiny single-tile shapes (copy path: D not lane-aligned) ----------
    N, D, S = 16, 32, 4
    x = jax.random.normal(k1, (N, D), dtype=jnp.float32)
    idx = jax.random.randint(k2, (N,), 0, S, dtype=jnp.int32)
    idx = idx.at[:S].set(jnp.arange(S, dtype=jnp.int32))   # every segment non-empty
    out = jax.block_until_ready(mean_pooling(x, idx, num_segments=S))
    ref = _reference(x, idx, S)
    assert out.shape == (S, D)
    assert jnp.allclose(out, ref, atol=1e-4, rtol=1e-4), "mismatch vs reference (test 1)"

    # --- test 2: tiled D x N reduction with user tiles (copy path, grid (2,3)) ----
    N, D, S = 300, 200, 12
    x = jax.random.normal(k3, (N, D), dtype=jnp.float32)
    idx = jax.random.randint(k4, (N,), 0, S, dtype=jnp.int32)
    out = jax.block_until_ready(mean_pooling(x, idx, num_segments=S, tn=128, td=128))
    ref = _reference(x, idx, S)
    assert out.shape == (S, D)
    assert jnp.allclose(out, ref, atol=1e-4, rtol=1e-4), "mismatch vs reference (test 2)"

    # --- test 3: lane-aligned D, ragged N -> no-copy streaming path + tail mask ---
    N, D, S = 333, 256, 10
    x = jax.random.normal(k5, (N, D), dtype=jnp.float32)
    idx = jax.random.randint(k6, (N,), 0, S, dtype=jnp.int32)
    out = jax.block_until_ready(mean_pooling(x, idx, num_segments=S))
    ref = _reference(x, idx, S)
    assert out.shape == (S, D)
    assert jnp.allclose(out, ref, atol=1e-4, rtol=1e-4), "mismatch vs reference (test 3)"

    # --- test 4: bf16 inputs, no-copy path (bf16 one-hot matmul, f32 accumulate) --
    N, D, S = 500, 128, 6
    x = jax.random.normal(k7, (N, D), dtype=jnp.bfloat16)
    idx = jax.random.randint(k8, (N,), 0, S, dtype=jnp.int32)
    out = jax.block_until_ready(mean_pooling(x, idx, num_segments=S))
    ref = _reference(x, idx, S)
    assert out.shape == (S, D)
    assert jnp.allclose(out.astype(jnp.float32), ref.astype(jnp.float32),
                        atol=2e-2, rtol=2e-2), "mismatch vs reference (test 4)"

    print("KERNEL_OK")
</pallas_src>

<mosaic_0001>
module attributes {stable_mosaic.version = 11 : i64} {
  func.func @_mean_pool_kernel(%arg0: i32, %arg1: i32, %arg2: memref<1x128xi32, #tpu.memory_space<vmem>>, %arg3: memref<128x128xf32, #tpu.memory_space<vmem>>, %arg4: memref<8x128xf32, #tpu.memory_space<vmem>>, %arg5: memref<8x128xf32, #tpu.memory_space<vmem>>, %arg6: memref<8x1xf32, #tpu.memory_space<vmem>>) attributes {dimension_semantics = [#tpu.dimension_semantics<parallel>, #tpu.dimension_semantics<arbitrary>], iteration_bounds = array<i64: 1, 1>, scalar_prefetch = 0 : i64, scratch_operands = 2 : i64, tpu.core_type = #tpu.core_type<tc>, window_params = [{transform_indices = @transform_0, window_bounds = array<i64: 1, 128>}, {transform_indices = @transform_1, window_bounds = array<i64: 128, 128>}, {transform_indices = @transform_2, window_bounds = array<i64: 8, 128>}]} {
    %c0_i32 = arith.constant 0 : i32
    %0 = arith.cmpi eq, %arg1, %c0_i32 : i32
    %1 = arith.extui %0 : i1 to i32
    %c0_i32_0 = arith.constant 0 : i32
    %2 = arith.cmpi ne, %1, %c0_i32_0 : i32
    scf.if %2 {
      %cst_15 = arith.constant 0.000000e+00 : f32
      %24 = vector.broadcast %cst_15 : f32 to vector<8x128xf32>
      %c0_16 = arith.constant 0 : index
      %c0_17 = arith.constant 0 : index
      %25 = vector.load %arg5[%c0_16, %c0_17] : memref<8x128xf32, #tpu.memory_space<vmem>>, vector<8x128xf32>
      tpu.vector_store %arg5[%c0_16, %c0_17], %24 {strides = array<i32>} : memref<8x128xf32, #tpu.memory_space<vmem>>, vector<8x128xf32>,
      %cst_18 = arith.constant 0.000000e+00 : f32
      %26 = vector.broadcast %cst_18 : f32 to vector<8x1xf32>
      %c0_19 = arith.constant 0 : index
      %c0_20 = arith.constant 0 : index
      %27 = vector.load %arg6[%c0_19, %c0_20] : memref<8x1xf32, #tpu.memory_space<vmem>>, vector<8x1xf32>
      tpu.vector_store %arg6[%c0_19, %c0_20], %26 {strides = array<i32>} : memref<8x1xf32, #tpu.memory_space<vmem>>, vector<8x1xf32>,
    } else {
    }
    %c0 = arith.constant 0 : index
    %c0_1 = arith.constant 0 : index
    %3 = vector.load %arg3[%c0, %c0_1] : memref<128x128xf32, #tpu.memory_space<vmem>>, vector<128x128xf32>
    %c0_2 = arith.constant 0 : index
    %c0_3 = arith.constant 0 : index
    %4 = vector.load %arg2[%c0_2, %c0_3] : memref<1x128xi32, #tpu.memory_space<vmem>>, vector<1x128xi32>
    %5 = tpu.iota {dimensions = array<i32: 0>} : vector<8x128xi32>
    %6 = vector.broadcast %4 : vector<1x128xi32> to vector<8x128xi32>
    %7 = arith.cmpi eq, %5, %6 : vector<8x128xi32>
    %8 = arith.extui %7 : vector<8x128xi1> to vector<8x128xi32>
    %9 = arith.sitofp %8 : vector<8x128xi32> to vector<8x128xf32>
    %c0_4 = arith.constant 0 : index
    %c0_5 = arith.constant 0 : index
    %10 = vector.load %arg5[%c0_4, %c0_5] : memref<8x128xf32, #tpu.memory_space<vmem>>, vector<8x128xf32>
    %cst = arith.constant dense<0.000000e+00> : vector<8x128xf32>
    %11 = tpu.matmul %9, %3, %cst {dimension_numbers = #tpu.dot_dimension_numbers<[1], [0], [0], [1], [0, 0, 1, 1], [], []>} : vector<8x128xf32>, vector<128x128xf32>, vector<8x128xf32> -> vector<8x128xf32>
    %12 = arith.addf %10, %11 : vector<8x128xf32>
    %c0_6 = arith.constant 0 : index
    %c0_7 = arith.constant 0 : index
    %13 = vector.load %arg5[%c0_6, %c0_7] : memref<8x128xf32, #tpu.memory_space<vmem>>, vector<8x128xf32>
    tpu.vector_store %arg5[%c0_6, %c0_7], %12 {strides = array<i32>} : memref<8x128xf32, #tpu.memory_space<vmem>>, vector<8x128xf32>,
    %c0_8 = arith.constant 0 : index
    %c0_9 = arith.constant 0 : index
    %14 = vector.load %arg6[%c0_8, %c0_9] : memref<8x1xf32, #tpu.memory_space<vmem>>, vector<8x1xf32>
    %15 = arith.extui %7 : vector<8x128xi1> to vector<8x128xi32>
    %16 = arith.sitofp %15 : vector<8x128xi32> to vector<8x128xf32>
    %cst_10 = arith.constant dense<0.000000e+00> : vector<8xf32>
    %17 = vector.multi_reduction <add>, %16, %cst_10 [1] : vector<8x128xf32> to vector<8xf32>
    %18 = vector.shape_cast %17 : vector<8xf32> to vector<8x1xf32>
    %19 = arith.addf %14, %18 : vector<8x1xf32>
    %c0_11 = arith.constant 0 : index
    %c0_12 = arith.constant 0 : index
    %20 = vector.load %arg6[%c0_11, %c0_12] : memref<8x1xf32, #tpu.memory_space<vmem>>, vector<8x1xf32>
    tpu.vector_store %arg6[%c0_11, %c0_12], %19 {strides = array<i32>} : memref<8x1xf32, #tpu.memory_space<vmem>>, vector<8x1xf32>,
    %c0_i32_13 = arith.constant 0 : i32
    %21 = arith.cmpi eq, %arg1, %c0_i32_13 : i32
    %22 = arith.extui %21 : i1 to i32
    %c0_i32_14 = arith.constant 0 : i32
    %23 = arith.cmpi ne, %22, %c0_i32_14 : i32
    scf.if %23 {
      %c0_15 = arith.constant 0 : index
      %c0_16 = arith.constant 0 : index
      %24 = vector.load %arg6[%c0_15, %c0_16] : memref<8x1xf32, #tpu.memory_space<vmem>>, vector<8x1xf32>
      %cst_17 = arith.constant 1.000000e+00 : f32
      %25 = vector.broadcast %cst_17 : f32 to vector<8x1xf32>
      %26 = arith.maximumf %24, %25 : vector<8x1xf32>
      %27 = tpu.reciprocal %26 : vector<8x1xf32> -> vector<8x1xf32>
      %c0_18 = arith.constant 0 : index
      %c0_19 = arith.constant 0 : index
      %28 = vector.load %arg5[%c0_18, %c0_19] : memref<8x128xf32, #tpu.memory_space<vmem>>, vector<8x128xf32>
      %29 = vector.broadcast %27 : vector<8x1xf32> to vector<8x128xf32>
      %30 = arith.mulf %28, %29 : vector<8x128xf32>
      %c0_20 = arith.constant 0 : index
      %c0_21 = arith.constant 0 : index
      %31 = vector.load %arg4[%c0_20, %c0_21] : memref<8x128xf32, #tpu.memory_space<vmem>>, vector<8x128xf32>
      tpu.vector_store %arg4[%c0_20, %c0_21], %30 {strides = array<i32>} : memref<8x128xf32, #tpu.memory_space<vmem>>, vector<8x128xf32>,
    } else {
    }
    return
  }
  func.func @transform_0(%arg0: i32, %arg1: i32) -> (i32, i32) {
    %c0_i32 = arith.constant 0 : i32
    %c0_i32_0 = arith.constant 0 : i32
    return %c0_i32, %arg1 : i32, i32
  }
  func.func @transform_1(%arg0: i32, %arg1: i32) -> (i32, i32) {
    %c0_i32 = arith.constant 0 : i32
    return %arg1, %arg0 : i32, i32
  }
  func.func @transform_2(%arg0: i32, %arg1: i32) -> (i32, i32) {
    %c0_i32 = arith.constant 0 : i32
    %c0_i32_0 = arith.constant 0 : i32
    return %c0_i32, %arg0 : i32, i32
  }
}

</mosaic_0001>

<bundles_post_ra>
// kernel: tpu_custom_call.1
= control target key start
LH: loop header
LB: loop body
LE: loop exit
PB: predicated region body
PF: predicated region fallthrough
CT: control target
= control target key end

     0   :  { %7 = vsyncpa [#allocation5], 0  ;;  %s350_s0 = inlined_call_operand.hbm [shape: s32[1,128], index: 0, kind: input, shape index: {}]   ;;  %s351_s1 = inlined_call_operand.hbm [shape: f32[128,128], index: 1, kind: input, shape index: {}]   ;;  %s352_s2 = inlined_call_operand.hbm [shape: f32[8,128], index: 2, kind: output, shape index: {}]  }
   0x1   :  { %8 = vsyncpa [#allocation8], 0 }
   0x2   :  { %9 = vsyncpa [#allocation6], 0  ;;  %s313_s9 = smov [#allocation4]   ;;  %s314_s11 = smov [#allocation7]  }
   0x3   :  { %s16_s10 = sshll.u32 %s313_s9, 4  ;;  %s25_s12 = sshll.u32 %s314_s11, 4  ;;  %s17_s10 = int_to_ptr.vmem [resolvable:$true] %s16_s10  ;;  %s26_s12 = int_to_ptr.vmem [resolvable:$true] %s25_s12 }
   0x4   :  { %s255_s13 = scalar_lea.vmem %s17_s10, 16  ;;  %s259_s14 = scalar_lea.vmem %s17_s10, 32 }
   0x5   :  { %p256_p0 = scmp.ne.s32.totalorder %s17_s10, %s255_s13  ;;  %p260_p1 = scmp.lt.s32.totalorder %s17_s10, %s17_s10 }
   0x6   :  { %p261_p2 = scmp.lt.s32.totalorder %s259_s14, %s255_s13 }
   0x8   :  { %p262_p3 = por %p261_p2, %p260_p1 }
   0xa   :  { %p263_p4 = pnand %p262_p3, %p256_p0 }
   0xc   :  { %266 = shalt.err (!%p263_p4)
}
   0xd   :  { %19 = dma.hbm_to_vmem [thread:$0]  %s350_s0, 16, %s17_s10, [#allocation5]  }
   0xe   :  { %s275_s17 = scalar_lea.vmem %s26_s12, 2048  ;;  %p280_p6 = scmp.lt.s32.totalorder %s26_s12, %s26_s12 }
   0xf   :  { %p276_p5 = scmp.ne.s32.totalorder %s26_s12, %s275_s17  ;;  %p281_p7 = scmp.lt.s32.totalorder %s275_s17, %s275_s17 }
  0x11   :  { %p282_p8 = por %p281_p7, %p280_p6 }
  0x13   :  { %p283_p9 = pnand %p282_p8, %p276_p5 }
  0x15   :  { %286 = shalt.err (!%p283_p9)
}
  0x16   :  { %s315_s18 = smov 128   ;;  %s316_s19 = smov 8  }
  0x17   :  { %31 = dma.hbm_to_vmem [thread:$0]  %s351_s1, 2048, %s26_s12, [#allocation8], %s315_s18, %s315_s18, %s316_s19  }
  0x18   :  { %307 = dma.done.wait [#allocation5], 16  }
  0x19   :  { %308 = vsyncadd [#allocation5], 4294967280 }
  0x1a   :  { %309 = dma.done.wait [#allocation8], 2048  }
  0x1b   :  { %310 = vsyncadd [#allocation8], 4294965248  ;;  %v62_v0 = vlaneseq  ;;  %v317_v1 = vmov 0.0   ;;  %vm318_vm0 = vmmov 0   ;;  %vm43_vm1 = vcmask 7168   ;;  %v60_v4 = vld [vmem:[#allocation7 + $0x78] sm:$0xff] }
  0x1c   :  { %200 = vmatprep.subr.mxu0 %v317_v1  ;;  %232 = vmatprep.mubr.msk.f32.mxu0 %vm318_vm0, %v317_v1  ;;  %44 = vst.msk [vmem:[#allocation3] sm:$0xff] %vm43_vm1, %v317_v1  ;;  %v180_v3 = vld [vmem:[#allocation4] ss:$0 sm:$0xff]  ;;  %v59_v5 = vld [vmem:[#allocation7 + $0x70] sm:$0xff]  ;;  %v58_v7 = vld [vmem:[#allocation7 + $0x68] sm:$0xff]  ;;  %v319_v15 = vmov 0  }
  0x1d   :  { %v63_v2 = vshrl.u32 %v62_v0, 7  ;;  %201 = vmatpush3.msra.mxu0 %v60_v4  ;;  %v57_v8 = vld [vmem:[#allocation7 + $0x60] sm:$0xff]  ;;  %v56_v9 = vld [vmem:[#allocation7 + $0x58] sm:$0xff]  ;;  %v55_v10 = vld [vmem:[#allocation7 + $0x50] sm:$0xff]  ;;  %244 = vset.pattern.permute.xlu0 %v319_v15  ;;  %v320_v22 = vmov 1.0   ;;  %s321_s0 = smov [#allocation9]  }
  0x1e   :  { %202 = vmatprep.subr.mxu0 %v317_v1  ;;  %v54_v11 = vld [vmem:[#allocation7 + $0x48] sm:$0xff]  ;;  %v53_v12 = vld [vmem:[#allocation7 + $0x40] sm:$0xff]  ;;  %v52_v13 = vld [vmem:[#allocation7 + $0x38] sm:$0xff]  ;;  %s170_s1 = sshll.u32 %s321_s0, 4  ;;  %s171_s1 = int_to_ptr.vmem [resolvable:$true] %s170_s1 }
  0x1f   :  { %vm68_vm2 = vcmp.eq.s32.totalorder %v63_v2, %v180_v3  ;;  %203 = vmatpush3.msra.mxu0 %v59_v5  ;;  %v51_v14 = vld [vmem:[#allocation7 + $0x30] sm:$0xff]  ;;  %v50_v16 = vld [vmem:[#allocation7 + $0x28] sm:$0xff]  ;;  %v49_v17 = vld [vmem:[#allocation7 + $0x20] sm:$0xff]  ;;  %s287_s22 = scalar_lea.vmem %s171_s1, 128  ;;  %p292_p11 = scmp.lt.s32.totalorder %s171_s1, %s171_s1 }
  0x20   :  { %v181_v6 = vsel %vm68_vm2, 1.0, %v317_v1  ;;  %204 = vmatprep.subr.mxu0 %v317_v1  ;;  %v48_v18 = vld [vmem:[#allocation7 + $0x18] sm:$0xff]  ;;  %v47_v19 = vld [vmem:[#allocation7 + $0x10] sm:$0xff]  ;;  %v46_v20 = vld [vmem:[#allocation7 + $0x8] sm:$0xff]  ;;  %p288_p10 = scmp.ne.s32.totalorder %s171_s1, %s287_s22  ;;  %p293_p12 = scmp.lt.s32.totalorder %s287_s22, %s287_s22 }
  0x21   :  { %145 = vadd.xlane.f32.xlu0 %v181_v6  ;;  %205 = vmatpush3.msra.mxu0 %v58_v7  ;;  %v45_v21 = vld [vmem:[#allocation7] sm:$0xff] }
  0x22   :  { %206 = vmatprep.subr.mxu0 %v317_v1  ;;  %p294_p13 = por %p293_p12, %p292_p11 }
  0x23   :  { %207 = vmatpush3.msra.mxu0 %v57_v8  ;;  %v144_v23 = vld [vmem:[#allocation3] sm:$0xff] }
  0x24   :  { %208 = vmatprep.subr.mxu0 %v317_v1  ;;  %p295_p0 = pnand %p294_p13, %p288_p10 }
  0x25   :  { %209 = vmatpush3.msra.mxu0 %v56_v9 }
  0x26   :  { %210 = vmatprep.subr.mxu0 %v317_v1 }
  0x27   :  { %211 = vmatpush3.msra.mxu0 %v55_v10 }
  0x28   :  { %212 = vmatprep.subr.mxu0 %v317_v1 }
  0x29   :  { %213 = vmatpush3.msra.mxu0 %v54_v11 }
  0x2a   :  { %214 = vmatprep.subr.mxu0 %v317_v1 }
  0x2b   :  { %215 = vmatpush3.msra.mxu0 %v53_v12 }
  0x2c   :  { %216 = vmatprep.subr.mxu0 %v317_v1 }
  0x2d   :  { %217 = vmatpush3.msra.mxu0 %v52_v13 }
  0x2e   :  { %218 = vmatprep.subr.mxu0 %v317_v1 }
  0x2f   :  { %219 = vmatpush3.msra.mxu0 %v51_v14 }
  0x30   :  { %220 = vmatprep.subr.mxu0 %v317_v1 }
  0x31   :  { %221 = vmatpush3.msra.mxu0 %v50_v16 }
  0x32   :  { %222 = vmatprep.subr.mxu0 %v317_v1 }
  0x33   :  { %223 = vmatpush3.msra.mxu0 %v49_v17 }
  0x34   :  { %224 = vmatprep.subr.mxu0 %v317_v1 }
  0x35   :  { %225 = vmatpush3.msra.mxu0 %v48_v18 }
  0x36   :  { %226 = vmatprep.subr.mxu0 %v317_v1 }
  0x37   :  { %227 = vmatpush3.msra.mxu0 %v47_v19 }
  0x38   :  { %228 = vmatprep.subr.mxu0 %v317_v1 }
  0x39   :  { %229 = vmatpush3.msra.mxu0 %v46_v20 }
  0x3a   :  { %230 = vmatprep.subr.mxu0 %v317_v1 }
  0x3b   :  { %231 = vmatpush3.msra.mxu0 %v45_v21 }
  0x3c   :  { %233 = vmatmul.mubr.msk.f32.vlgmr.msra.gmra.mxu0 %vm68_vm2, %v320_v22 }
  0xaa   :  { %v146_v24 = vpop.xlane.xlu0 %145 }
  0xab   :  { %v147_v25 = vadd.f32 %v146_v24, %v144_v23 }
  0xad   :  { %149 = vst.msk [vmem:[#allocation3] sm:$0xff] %vm43_vm1, %v147_v25 }
  0xb4   :  { %v153_v26 = vld [vmem:[#allocation3] sm:$0xff] }
  0xb5   :  { %v154_v27 = vmax.f32 %v153_v26, 1.0 }
  0xb7   :  { %245 = vrcp.f32 %v154_v27 }
  0xc4   :  { %v246_v28 = vpop.eup %245 }
  0xc5   :  { %159 = vperm.xlu0 %244, %v246_v28  }
  0xfc   :  { %v138_v29 = vpop.f32.mrf.mxu0 }
  0xfe   :  { %v234_v30 = vpop.f32.mrf.mxu0 }
 0x140   :  { %v160_v31 = vpop.permute.xlu0 %159 }
 0x141   :  { %v162_v32 = vmul.f32 %v160_v31, %v138_v29 }
 0x143   :  { %163 = vst [vmem:[#allocation9] sm:$0xff] %v162_v32 }
 0x144   :  { %298 = shalt.err (!%p295_p0)
}
 0x145   :  { %173 = dma.vmem_to_hbm [thread:$0]  %s171_s1, 128, %s352_s2, [#allocation6]  }
 0x146   :  { %311 = dma.done.wait [#allocation6], 128  }
 0x147   :  { %312 = vsyncadd [#allocation6], 4294967168 }
 0x148   :  { %177 = vsyncpa [#allocation5], 1 }
 0x149   :  { %178 = vsyncpa [#allocation8], 1 }
 0x14a   :  { %179 = vsyncpa [#allocation6], 1 }

</bundles_post_ra>
